<compile_context>
chip_gen: v7x
topology: tpu7x:2x2x1
jax: 0.10.0
libtpu: 0.0.40
codegen_flags: <defaults>
</compile_context>

<pallas_src>
import jax
import jax.numpy as jnp
from jax import lax
from jax.experimental import pallas as pl
from jax.experimental.pallas import tpu as pltpu

# ----------------------------- model hyper-params -----------------------------
OUT_STRIDE = 16
C_BACKBONE = 128          # stand-in for resnet50's 2048 (keeps K lane-dense)
C_ASPP = 128              # stand-in for 256 (full 128-lane vregs / MXU columns)
NUM_CLASSES = 6
C_CLS_PAD = 8             # classifier rows padded to 8 sublanes (not 128 lanes)
BN_EPS = 3e-4             # nn.BatchNorm2d(c_aspp, momentum=0.0003) -> eps slot = 0.0003
ASPP_DILATIONS = (12, 24, 36)     # mult = 2


# ------------------------------ small config helpers ------------------------------
def _vmem_limit_bytes():
    """Per-generation VMEM budget (v7x: 64 MiB/TC vs 128 MiB on v5e/v6e)."""
    cap = 64 * 1024 * 1024                      # conservative fallback = v7x per-core VMEM
    try:
        cap = int(getattr(pltpu.get_tpu_info(), "vmem_capacity_bytes", cap))
    except Exception:
        pass
    return max(min(cap * 3 // 4, 110 * 1024 * 1024), 32 * 1024 * 1024)


def _pick_col_tiles(hw_out):
    """Split the H*W output lanes into >=128-wide tiles: bounded VMEM for the
    interpolation matrix and >1 grid step per TensorCore so DMA pipelines with compute."""
    for tile in (1024, 2048, 512, 256, 128):
        if hw_out % tile == 0 and hw_out // tile >= 2:
            return hw_out // tile, tile
    return 1, hw_out


# ------------------------------- fused Pallas kernel --------------------------------
def _deeplab_fused_kernel(patches_ref, w_patch_ref, w_br_ref, w5_ref, wc2_ref,
                          w_out_t_ref, sh_br_ref, sh_52_ref, b_out_ref, bt_ref,
                          o_ref, yt_ref):
    """grid = (image, output-column tile).

    The whole backbone-stub + ASPP head + classifier runs once per image under
    pl.when(j == 0); its transposed logits (classes_pad8, h*w) persist in the `yt_ref`
    VMEM scratch and are reused by every column tile of the bilinear-upsample matmul.
    """
    j = pl.program_id(1)
    c_aspp = w5_ref.shape[1]

    @pl.when(j == 0)
    def _head():
        # ---- backbone stand-in: patch-linear + ReLU -> C5 (h*w, C_BACKBONE) ----
        c5 = jnp.maximum(
            jnp.dot(patches_ref[0], w_patch_ref[...],
                    preferred_element_type=jnp.float32), 0.0)
        x = c5.astype(jnp.bfloat16)

        # ---- aspp1..aspp4: every dilated branch reduces to its centre tap at this
        #      feature-map size, so all four branches are ONE fused matmul (BN folded). ----
        x1234 = jnp.maximum(
            jnp.dot(x, w_br_ref[...], preferred_element_type=jnp.float32)
            + sh_br_ref[...], 0.0)                                    # (hw, 4*c_aspp)

        # ---- aspp5: global average pool -> 1x1 conv -> BN -> ReLU ----
        pooled = jnp.mean(c5, axis=0, keepdims=True).astype(jnp.bfloat16)
        x5 = jnp.maximum(
            jnp.dot(pooled, w5_ref[...], preferred_element_type=jnp.float32)
            + sh_52_ref[0:1, :], 0.0)                                 # (1, c_aspp)

        # ---- conv2 over the 5-branch concat, decomposed (no concat buffer); the
        #      bilinear upsample of the 1x1 x5 map is a row broadcast.  bn2 + ReLU. ----
        acc = jnp.dot(x1234.astype(jnp.bfloat16), wc2_ref[:4 * c_aspp, :],
                      preferred_element_type=jnp.float32)
        acc = acc + jnp.dot(x5.astype(jnp.bfloat16), wc2_ref[4 * c_aspp:, :],
                            preferred_element_type=jnp.float32)
        y = jnp.maximum(acc + sh_52_ref[1:2, :], 0.0)                 # (hw, c_aspp)

        # ---- conv_out classifier, produced directly as logits^T = W_out^T @ y^T
        #      (A @ B^T dot_general, same pattern as q @ k^T) -> (classes_pad8, hw) ----
        logits_t = lax.dot_general(
            w_out_t_ref[...], y.astype(jnp.bfloat16),
            (((1,), (1,)), ((), ())), preferred_element_type=jnp.float32)
        yt_ref[...] = (logits_t + b_out_ref[...]).astype(jnp.bfloat16)

    # ---- bilinear upsample (align_corners=True): one lane-dense column tile per step ----
    o_ref[0] = jnp.dot(yt_ref[...], bt_ref[...], preferred_element_type=jnp.float32)


def deeplab_fused_call(patches, kp, bt, *, n_col_tiles, tile_out):
    """patches: (N, h*w, s*s*3) bf16, bt: (h*w, H*W) bf16 -> (N, C_CLS_PAD, H*W) f32."""
    N, hw, k_patch = patches.shape
    hw_out = bt.shape[-1]

    def const_spec(a):
        z = (0,) * a.ndim
        return pl.BlockSpec(a.shape, lambda n, j, z=z: z)

    weights = (kp["w_patch"], kp["w_br"], kp["w5"], kp["wc2"], kp["w_out_t"],
               kp["sh_br"], kp["sh_52"], kp["b_out"])

    return pl.pallas_call(
        _deeplab_fused_kernel,
        out_shape=jax.ShapeDtypeStruct((N, C_CLS_PAD, hw_out), jnp.float32),
        grid=(N, n_col_tiles),
        in_specs=[pl.BlockSpec((1, hw, k_patch), lambda n, j: (n, 0, 0))]
                + [const_spec(a) for a in weights]
                + [pl.BlockSpec((hw, tile_out), lambda n, j: (0, j))],
        out_specs=pl.BlockSpec((1, C_CLS_PAD, tile_out), lambda n, j: (n, 0, j)),
        scratch_shapes=[pltpu.VMEM((C_CLS_PAD, hw), jnp.bfloat16)],
        compiler_params=pltpu.CompilerParams(
            dimension_semantics=("parallel", "arbitrary"),
            vmem_limit_bytes=_vmem_limit_bytes(),
        ),
    )(patches, *weights, bt)


# ------------------------------- JAX glue helpers -------------------------------
def interp_matrix(out_size, in_size):
    """1-D bilinear interpolation matrix, align_corners=True (as in the reference)."""
    if in_size == 1:
        return jnp.ones((out_size, 1), jnp.float32)
    pos = jnp.arange(out_size, dtype=jnp.float32) * (in_size - 1) / (out_size - 1)
    i0 = jnp.clip(jnp.floor(pos).astype(jnp.int32), 0, in_size - 2)
    frac = pos - i0.astype(jnp.float32)
    rows = jnp.arange(out_size)
    A = jnp.zeros((out_size, in_size), jnp.float32)
    A = A.at[rows, i0].add(1.0 - frac)
    A = A.at[rows, i0 + 1].add(frac)
    return A


def bilinear_matrix_T(out_h, out_w, in_h, in_w):
    """(in_h*in_w, out_h*out_w) matrix B^T with out_flat = logits_flat @ B^T."""
    A_h = interp_matrix(out_h, in_h)                 # (out_h, in_h)
    A_w = interp_matrix(out_w, in_w)                 # (out_w, in_w)
    bt = jnp.einsum("yi,xj->ijyx", A_h, A_w)         # [i, j, y, x]
    return bt.reshape(in_h * in_w, out_h * out_w)


def patchify(x_nchw):
    """Non-overlapping s x s patches -> (N, h*w, s*s*Cin) bf16 (backbone-stub input)."""
    # TODO(synk): at real input sizes fold this relayout into the kernel as strided window
    # DMAs; at 64x64 it is a negligible one-off XLA op (cast to bf16 first -> half the bytes).
    N, Cin, H, W = x_nchw.shape
    s = OUT_STRIDE
    h, w = H // s, W // s
    x = jnp.transpose(x_nchw.astype(jnp.bfloat16), (0, 2, 3, 1))
    x = x.reshape(N, h, s, w, s, Cin).transpose(0, 1, 3, 2, 4, 5)
    return x.reshape(N, h * w, s * s * Cin)


def pack_kernel_params(p, h, w):
    """Build kernel-ready weights for a C5 map of size (h, w)."""
    # Contributing taps of a dilated 3x3 conv (padding == dilation d): the tap at offset
    # ((ky-1)*d, (kx-1)*d) overlaps the h x w map iff |offset| < h (resp. < w).  With
    # out_stride=16 and small inputs h, w <= 12 = min dilation, so every dilated branch
    # reduces exactly to its centre tap (off-centre taps only ever read zero padding).
    assert h <= min(ASPP_DILATIONS) and w <= min(ASPP_DILATIONS), (
        "off-centre dilated taps contribute at this feature-map size")
    # TODO(synk): for C5 maps larger than the dilation the off-centre taps contribute;
    # generate their windows in-kernel from a VMEM-padded tile and stack them along K.
    centre = 4  # (ky, kx) = (1, 1) in the (9, C_in, C_out) tap layout
    w_br = jnp.concatenate(
        [p["w1"], p["w2"][centre], p["w3"][centre], p["w4"][centre]], axis=1)
    sh_br = jnp.concatenate([p["s1"], p["s2"], p["s3"], p["s4"]], axis=0)[None, :]
    sh_52 = jnp.stack([p["s5"], p["sc2"]], axis=0)                    # (2, C_ASPP)

    pad_c = C_CLS_PAD - NUM_CLASSES
    w_out_t = jnp.pad(p["w_out"], ((0, 0), (0, pad_c))).T             # (C_CLS_PAD, C_ASPP)
    b_out = jnp.pad(p["b_out"], (0, pad_c))[:, None]                  # (C_CLS_PAD, 1)

    return dict(
        w_patch=p["w_patch"].astype(jnp.bfloat16),
        w_br=w_br.astype(jnp.bfloat16),
        w5=p["w5"].astype(jnp.bfloat16),
        wc2=p["wc2"].astype(jnp.bfloat16),
        w_out_t=w_out_t.astype(jnp.bfloat16),
        sh_br=sh_br.astype(jnp.float32),
        sh_52=sh_52.astype(jnp.float32),
        b_out=b_out.astype(jnp.float32),
    )


# -------------------------------- parameter init --------------------------------
def _bn_fold(key, w_f32):
    """Fold eval-mode BatchNorm scale into the conv weight; return (f32 weight, f32 shift)."""
    c_out = w_f32.shape[-1]
    k1, k2, k3, k4 = jax.random.split(key, 4)
    gamma = 1.0 + 0.1 * jax.random.normal(k1, (c_out,), jnp.float32)
    beta = 0.1 * jax.random.normal(k2, (c_out,), jnp.float32)
    mean = 0.1 * jax.random.normal(k3, (c_out,), jnp.float32)
    var = 0.5 + jnp.abs(jax.random.normal(k4, (c_out,), jnp.float32))
    scale = gamma / jnp.sqrt(var + BN_EPS)
    shift = beta - mean * scale
    return w_f32 * scale, shift


def init_params(key):
    ks = jax.random.split(key, 16)

    def rnd(k, shape):
        return 0.05 * jax.random.normal(k, shape, jnp.float32)

    p = {}
    p["w_patch"] = rnd(ks[0], (OUT_STRIDE * OUT_STRIDE * 3, C_BACKBONE))
    p["w1"], p["s1"] = _bn_fold(ks[2], rnd(ks[1], (C_BACKBONE, C_ASPP)))
    p["w2"], p["s2"] = _bn_fold(ks[4], rnd(ks[3], (9, C_BACKBONE, C_ASPP)))   # dilation 12
    p["w3"], p["s3"] = _bn_fold(ks[6], rnd(ks[5], (9, C_BACKBONE, C_ASPP)))   # dilation 24
    p["w4"], p["s4"] = _bn_fold(ks[8], rnd(ks[7], (9, C_BACKBONE, C_ASPP)))   # dilation 36
    p["w5"], p["s5"] = _bn_fold(ks[10], rnd(ks[9], (C_BACKBONE, C_ASPP)))
    p["wc2"], p["sc2"] = _bn_fold(ks[12], rnd(ks[11], (5 * C_ASPP, C_ASPP)))
    p["w_out"] = rnd(ks[13], (C_ASPP, NUM_CLASSES))
    p["b_out"] = rnd(ks[14], (NUM_CLASSES,))
    return p


# --------------------------------- forward pass ---------------------------------
@jax.jit
def deeplabv3_forward(x_nchw, params):
    N, _, H, W = x_nchw.shape
    h, w = H // OUT_STRIDE, W // OUT_STRIDE

    patches = patchify(x_nchw)                                  # (N, h*w, s*s*3) bf16
    kp = pack_kernel_params(params, h, w)
    bt = bilinear_matrix_T(H, W, h, w).astype(jnp.bfloat16)     # (h*w, H*W) bf16
    n_tiles, tile_out = _pick_col_tiles(H * W)

    out = deeplab_fused_call(patches, kp, bt,
                             n_col_tiles=n_tiles, tile_out=tile_out)   # (N, 8, H*W) f32
    return out[:, :NUM_CLASSES, :].reshape(N, NUM_CLASSES, H, W)       # NCHW like PyTorch


# -------------------------------------- main -------------------------------------
if __name__ == "__main__":
    key = jax.random.PRNGKey(0)
    kx, kp = jax.random.split(key)
    x = jax.random.normal(kx, (2, 3, 64, 64), jnp.float32)      # NCHW like PyTorch
    params = init_params(kp)

    out = deeplabv3_forward(x, params)
    jax.block_until_ready(out)

    assert out.shape == (2, NUM_CLASSES, 64, 64), out.shape
    assert bool(jnp.all(jnp.isfinite(out)))
    print("KERNEL_OK")
</pallas_src>

<mosaic_0001>
module attributes {stable_mosaic.version = 11 : i64} {
  func.func private @main(%arg0: i32) attributes {dimension_semantics = [#tpu.dimension_semantics<core_parallel>], iteration_bounds = array<i64: 2>, tpu.core_type = #tpu.core_type<sc_scalar_subcore>, window_params = []} {
    return
  }
}

module attributes {stable_mosaic.version = 11 : i64} {
  func.func private @main(%arg0: i32) attributes {dimension_semantics = [#tpu.dimension_semantics<core_parallel>], iteration_bounds = array<i64: 2>, tpu.core_type = #tpu.core_type<sc_scalar_subcore>, window_params = []} {
    return
  }
}

module attributes {stable_mosaic.version = 11 : i64} {
  func.func @_deeplab_fused_kernel(%arg0: i32, %arg1: i32, %arg2: memref<1x16x768xbf16, #tpu.memory_space<vmem>>, %arg3: memref<768x128xbf16, #tpu.memory_space<vmem>>, %arg4: memref<128x512xbf16, #tpu.memory_space<vmem>>, %arg5: memref<128x128xbf16, #tpu.memory_space<vmem>>, %arg6: memref<640x128xbf16, #tpu.memory_space<vmem>>, %arg7: memref<8x128xbf16, #tpu.memory_space<vmem>>, %arg8: memref<1x512xf32, #tpu.memory_space<vmem>>, %arg9: memref<2x128xf32, #tpu.memory_space<vmem>>, %arg10: memref<8x1xf32, #tpu.memory_space<vmem>>, %arg11: memref<16x1024xbf16, #tpu.memory_space<vmem>>, %arg12: memref<1x8x1024xf32, #tpu.memory_space<vmem>>, %arg13: memref<8x16xbf16, #tpu.memory_space<vmem>>) attributes {dimension_semantics = [#tpu.dimension_semantics<parallel>, #tpu.dimension_semantics<arbitrary>], iteration_bounds = array<i64: 2, 4>, scalar_prefetch = 0 : i64, scratch_operands = 1 : i64, tpu.core_type = #tpu.core_type<tc>, window_params = [{transform_indices = @transform_0, window_bounds = array<i64: 1, 16, 768>}, {pipeline_mode = #tpu.pipeline_mode<synchronous>, transform_indices = @transform_1, window_bounds = array<i64: 768, 128>}, {pipeline_mode = #tpu.pipeline_mode<synchronous>, transform_indices = @transform_2, window_bounds = array<i64: 128, 512>}, {pipeline_mode = #tpu.pipeline_mode<synchronous>, transform_indices = @transform_3, window_bounds = array<i64: 128, 128>}, {pipeline_mode = #tpu.pipeline_mode<synchronous>, transform_indices = @transform_4, window_bounds = array<i64: 640, 128>}, {pipeline_mode = #tpu.pipeline_mode<synchronous>, transform_indices = @transform_5, window_bounds = array<i64: 8, 128>}, {pipeline_mode = #tpu.pipeline_mode<synchronous>, transform_indices = @transform_6, window_bounds = array<i64: 1, 512>}, {pipeline_mode = #tpu.pipeline_mode<synchronous>, transform_indices = @transform_7, window_bounds = array<i64: 2, 128>}, {pipeline_mode = #tpu.pipeline_mode<synchronous>, transform_indices = @transform_8, window_bounds = array<i64: 8, 1>}, {transform_indices = @transform_9, window_bounds = array<i64: 16, 1024>}, {transform_indices = @transform_10, window_bounds = array<i64: 1, 8, 1024>}]} {
    %c0_i32 = arith.constant 0 : i32
    %0 = arith.cmpi eq, %arg1, %c0_i32 : i32
    %1 = arith.extui %0 : i1 to i32
    %c0_i32_0 = arith.constant 0 : i32
    %2 = arith.cmpi ne, %1, %c0_i32_0 : i32
    scf.if %2 {
      %c0_7 = arith.constant 0 : index
      %c0_8 = arith.constant 0 : index
      %c0_9 = arith.constant 0 : index
      %9 = vector.load %arg2[%c0_7, %c0_8, %c0_9] : memref<1x16x768xbf16, #tpu.memory_space<vmem>>, vector<1x16x768xbf16>
      %10 = vector.shape_cast %9 : vector<1x16x768xbf16> to vector<16x768xbf16>
      %c0_10 = arith.constant 0 : index
      %c0_11 = arith.constant 0 : index
      %11 = vector.load %arg3[%c0_10, %c0_11] : memref<768x128xbf16, #tpu.memory_space<vmem>>, vector<768x128xbf16>
      %cst_12 = arith.constant dense<0.000000e+00> : vector<16x128xf32>
      %12 = tpu.matmul %10, %11, %cst_12 {dimension_numbers = #tpu.dot_dimension_numbers<[1], [0], [0], [1], [0, 0, 1, 1], [], []>} : vector<16x768xbf16>, vector<768x128xbf16>, vector<16x128xf32> -> vector<16x128xf32>
      %cst_13 = arith.constant 0.000000e+00 : f32
      %13 = vector.broadcast %cst_13 : f32 to vector<16x128xf32>
      %14 = arith.maximumf %12, %13 : vector<16x128xf32>
      %15 = arith.truncf %14 : vector<16x128xf32> to vector<16x128xbf16>
      %c0_14 = arith.constant 0 : index
      %c0_15 = arith.constant 0 : index
      %16 = vector.load %arg4[%c0_14, %c0_15] : memref<128x512xbf16, #tpu.memory_space<vmem>>, vector<128x512xbf16>
      %cst_16 = arith.constant dense<0.000000e+00> : vector<16x512xf32>
      %17 = tpu.matmul %15, %16, %cst_16 {dimension_numbers = #tpu.dot_dimension_numbers<[1], [0], [0], [1], [0, 0, 1, 1], [], []>} : vector<16x128xbf16>, vector<128x512xbf16>, vector<16x512xf32> -> vector<16x512xf32>
      %c0_17 = arith.constant 0 : index
      %c0_18 = arith.constant 0 : index
      %18 = vector.load %arg8[%c0_17, %c0_18] : memref<1x512xf32, #tpu.memory_space<vmem>>, vector<1x512xf32>
      %19 = vector.broadcast %18 : vector<1x512xf32> to vector<16x512xf32>
      %20 = arith.addf %17, %19 : vector<16x512xf32>
      %cst_19 = arith.constant 0.000000e+00 : f32
      %21 = vector.broadcast %cst_19 : f32 to vector<16x512xf32>
      %22 = arith.maximumf %20, %21 : vector<16x512xf32>
      %cst_20 = arith.constant dense<0.000000e+00> : vector<128xf32>
      %23 = vector.multi_reduction <add>, %14, %cst_20 [0] : vector<16x128xf32> to vector<128xf32>
      %24 = vector.shape_cast %23 : vector<128xf32> to vector<1x128xf32>
      %cst_21 = arith.constant 1.600000e+01 : f32
      %25 = vector.broadcast %cst_21 : f32 to vector<1x128xf32>
      %26 = arith.divf %24, %25 : vector<1x128xf32>
      %27 = arith.truncf %26 : vector<1x128xf32> to vector<1x128xbf16>
      %c0_22 = arith.constant 0 : index
      %c0_23 = arith.constant 0 : index
      %28 = vector.load %arg5[%c0_22, %c0_23] : memref<128x128xbf16, #tpu.memory_space<vmem>>, vector<128x128xbf16>
      %cst_24 = arith.constant dense<0.000000e+00> : vector<1x128xf32>
      %29 = tpu.matmul %27, %28, %cst_24 {dimension_numbers = #tpu.dot_dimension_numbers<[1], [0], [0], [1], [0, 0, 1, 1], [], []>} : vector<1x128xbf16>, vector<128x128xbf16>, vector<1x128xf32> -> vector<1x128xf32>
      %c0_25 = arith.constant 0 : index
      %c0_26 = arith.constant 0 : index
      %30 = vector.load %arg9[%c0_25, %c0_26] : memref<2x128xf32, #tpu.memory_space<vmem>>, vector<1x128xf32>
      %31 = arith.addf %29, %30 : vector<1x128xf32>
      %cst_27 = arith.constant 0.000000e+00 : f32
      %32 = vector.broadcast %cst_27 : f32 to vector<1x128xf32>
      %33 = arith.maximumf %31, %32 : vector<1x128xf32>
      %34 = arith.truncf %22 : vector<16x512xf32> to vector<16x512xbf16>
      %c0_28 = arith.constant 0 : index
      %c0_29 = arith.constant 0 : index
      %35 = vector.load %arg6[%c0_28, %c0_29] : memref<640x128xbf16, #tpu.memory_space<vmem>>, vector<512x128xbf16>
      %cst_30 = arith.constant dense<0.000000e+00> : vector<16x128xf32>
      %36 = tpu.matmul %34, %35, %cst_30 {dimension_numbers = #tpu.dot_dimension_numbers<[1], [0], [0], [1], [0, 0, 1, 1], [], []>} : vector<16x512xbf16>, vector<512x128xbf16>, vector<16x128xf32> -> vector<16x128xf32>
      %37 = arith.truncf %33 : vector<1x128xf32> to vector<1x128xbf16>
      %c512 = arith.constant 512 : index
      %c0_31 = arith.constant 0 : index
      %38 = vector.load %arg6[%c512, %c0_31] : memref<640x128xbf16, #tpu.memory_space<vmem>>, vector<128x128xbf16>
      %cst_32 = arith.constant dense<0.000000e+00> : vector<1x128xf32>
      %39 = tpu.matmul %37, %38, %cst_32 {dimension_numbers = #tpu.dot_dimension_numbers<[1], [0], [0], [1], [0, 0, 1, 1], [], []>} : vector<1x128xbf16>, vector<128x128xbf16>, vector<1x128xf32> -> vector<1x128xf32>
      %40 = vector.broadcast %39 : vector<1x128xf32> to vector<16x128xf32>
      %41 = arith.addf %36, %40 : vector<16x128xf32>
      %c1 = arith.constant 1 : index
      %c0_33 = arith.constant 0 : index
      %42 = vector.load %arg9[%c1, %c0_33] : memref<2x128xf32, #tpu.memory_space<vmem>>, vector<1x128xf32>
      %43 = vector.broadcast %42 : vector<1x128xf32> to vector<16x128xf32>
      %44 = arith.addf %41, %43 : vector<16x128xf32>
      %cst_34 = arith.constant 0.000000e+00 : f32
      %45 = vector.broadcast %cst_34 : f32 to vector<16x128xf32>
      %46 = arith.maximumf %44, %45 : vector<16x128xf32>
      %c0_35 = arith.constant 0 : index
      %c0_36 = arith.constant 0 : index
      %47 = vector.load %arg7[%c0_35, %c0_36] : memref<8x128xbf16, #tpu.memory_space<vmem>>, vector<8x128xbf16>
      %48 = arith.truncf %46 : vector<16x128xf32> to vector<16x128xbf16>
      %cst_37 = arith.constant dense<0.000000e+00> : vector<8x16xf32>
      %49 = tpu.matmul %47, %48, %cst_37 {dimension_numbers = #tpu.dot_dimension_numbers<[1], [1], [0], [0], [0, 0, 1, 0], [], []>} : vector<8x128xbf16>, vector<16x128xbf16>, vector<8x16xf32> -> vector<8x16xf32>
      %c0_38 = arith.constant 0 : index
      %c0_39 = arith.constant 0 : index
      %50 = vector.load %arg10[%c0_38, %c0_39] : memref<8x1xf32, #tpu.memory_space<vmem>>, vector<8x1xf32>
      %51 = vector.broadcast %50 : vector<8x1xf32> to vector<8x16xf32>
      %52 = arith.addf %49, %51 : vector<8x16xf32>
      %53 = arith.truncf %52 : vector<8x16xf32> to vector<8x16xbf16>
      %c0_40 = arith.constant 0 : index
      %c0_41 = arith.constant 0 : index
      %54 = vector.load %arg13[%c0_40, %c0_41] : memref<8x16xbf16, #tpu.memory_space<vmem>>, vector<8x16xbf16>
      tpu.vector_store %arg13[%c0_40, %c0_41], %53 {strides = array<i32>} : memref<8x16xbf16, #tpu.memory_space<vmem>>, vector<8x16xbf16>,
    } else {
    }
    %c0 = arith.constant 0 : index
    %c0_1 = arith.constant 0 : index
    %3 = vector.load %arg13[%c0, %c0_1] : memref<8x16xbf16, #tpu.memory_space<vmem>>, vector<8x16xbf16>
    %c0_2 = arith.constant 0 : index
    %c0_3 = arith.constant 0 : index
    %4 = vector.load %arg11[%c0_2, %c0_3] : memref<16x1024xbf16, #tpu.memory_space<vmem>>, vector<16x1024xbf16>
    %cst = arith.constant dense<0.000000e+00> : vector<8x1024xf32>
    %5 = tpu.matmul %3, %4, %cst {dimension_numbers = #tpu.dot_dimension_numbers<[1], [0], [0], [1], [0, 0, 1, 1], [], []>} : vector<8x16xbf16>, vector<16x1024xbf16>, vector<8x1024xf32> -> vector<8x1024xf32>
    %c0_4 = arith.constant 0 : index
    %c0_5 = arith.constant 0 : index
    %c0_6 = arith.constant 0 : index
    %6 = vector.load %arg12[%c0_4, %c0_5, %c0_6] : memref<1x8x1024xf32, #tpu.memory_space<vmem>>, vector<1x8x1024xf32>
    %7 = vector.shape_cast %6 : vector<1x8x1024xf32> to vector<8x1024xf32>
    %8 = vector.shape_cast %5 : vector<8x1024xf32> to vector<1x8x1024xf32>
    tpu.vector_store %arg12[%c0_4, %c0_5, %c0_6], %8 {strides = array<i32>} : memref<1x8x1024xf32, #tpu.memory_space<vmem>>, vector<1x8x1024xf32>,
    return
  }
  func.func @transform_0(%arg0: i32, %arg1: i32) -> (i32, i32, i32) {
    %c0_i32 = arith.constant 0 : i32
    %c0_i32_0 = arith.constant 0 : i32
    %c0_i32_1 = arith.constant 0 : i32
    return %arg0, %c0_i32, %c0_i32_0 : i32, i32, i32
  }
  func.func @transform_1(%arg0: i32, %arg1: i32) -> (i32, i32) {
    %c0_i32 = arith.constant 0 : i32
    %c0_i32_0 = arith.constant 0 : i32
    %c0_i32_1 = arith.constant 0 : i32
    return %c0_i32, %c0_i32_0 : i32, i32
  }
  func.func @transform_2(%arg0: i32, %arg1: i32) -> (i32, i32) {
    %c0_i32 = arith.constant 0 : i32
    %c0_i32_0 = arith.constant 0 : i32
    %c0_i32_1 = arith.constant 0 : i32
    return %c0_i32, %c0_i32_0 : i32, i32
  }
  func.func @transform_3(%arg0: i32, %arg1: i32) -> (i32, i32) {
    %c0_i32 = arith.constant 0 : i32
    %c0_i32_0 = arith.constant 0 : i32
    %c0_i32_1 = arith.constant 0 : i32
    return %c0_i32, %c0_i32_0 : i32, i32
  }
  func.func @transform_4(%arg0: i32, %arg1: i32) -> (i32, i32) {
    %c0_i32 = arith.constant 0 : i32
    %c0_i32_0 = arith.constant 0 : i32
    %c0_i32_1 = arith.constant 0 : i32
    return %c0_i32, %c0_i32_0 : i32, i32
  }
  func.func @transform_5(%arg0: i32, %arg1: i32) -> (i32, i32) {
    %c0_i32 = arith.constant 0 : i32
    %c0_i32_0 = arith.constant 0 : i32
    %c0_i32_1 = arith.constant 0 : i32
    return %c0_i32, %c0_i32_0 : i32, i32
  }
  func.func @transform_6(%arg0: i32, %arg1: i32) -> (i32, i32) {
    %c0_i32 = arith.constant 0 : i32
    %c0_i32_0 = arith.constant 0 : i32
    %c0_i32_1 = arith.constant 0 : i32
    return %c0_i32, %c0_i32_0 : i32, i32
  }
  func.func @transform_7(%arg0: i32, %arg1: i32) -> (i32, i32) {
    %c0_i32 = arith.constant 0 : i32
    %c0_i32_0 = arith.constant 0 : i32
    %c0_i32_1 = arith.constant 0 : i32
    return %c0_i32, %c0_i32_0 : i32, i32
  }
  func.func @transform_8(%arg0: i32, %arg1: i32) -> (i32, i32) {
    %c0_i32 = arith.constant 0 : i32
    %c0_i32_0 = arith.constant 0 : i32
    %c0_i32_1 = arith.constant 0 : i32
    return %c0_i32, %c0_i32_0 : i32, i32
  }
  func.func @transform_9(%arg0: i32, %arg1: i32) -> (i32, i32) {
    %c0_i32 = arith.constant 0 : i32
    %c0_i32_0 = arith.constant 0 : i32
    return %c0_i32, %arg1 : i32, i32
  }
  func.func @transform_10(%arg0: i32, %arg1: i32) -> (i32, i32, i32) {
    %c0_i32 = arith.constant 0 : i32
    %c0_i32_0 = arith.constant 0 : i32
    return %arg0, %c0_i32, %arg1 : i32, i32, i32
  }
}

</mosaic_0001>

<bundles_post_ra>
// kernel: deeplabv3_forward.1
= control target key start
LH: loop header
LB: loop body
LE: loop exit
PB: predicated region body
PF: predicated region fallthrough
CT: control target
= control target key end

     0   :  { %s3472_s0 = inlined_call_operand.vmem [shape: bf16[2,16,768], index: 0, kind: input, shape index: {}]   ;;  %s3473_s1 = inlined_call_operand.vmem [shape: bf16[768,128], index: 1, kind: input, shape index: {}]   ;;  %s3474_s2 = inlined_call_operand.vmem [shape: bf16[128,512], index: 2, kind: input, shape index: {}]   ;;  %s3475_s3 = inlined_call_operand.vmem [shape: bf16[128,128], index: 3, kind: input, shape index: {}]   ;;  %s3476_s4 = inlined_call_operand.vmem [shape: bf16[640,128], index: 4, kind: input, shape index: {}]   ;;  %s3477_s5 = inlined_call_operand.vmem [shape: bf16[8,128], index: 5, kind: input, shape index: {}]   ;;  %s3478_s6 = inlined_call_operand.vmem [shape: f32[1,512], index: 6, kind: input, shape index: {}]   ;;  %s3479_s7 = inlined_call_operand.vmem [shape: f32[2,128], index: 7, kind: input, shape index: {}]   ;;  %s3480_s8 = inlined_call_operand.vmem [shape: f32[8,1], index: 8, kind: input, shape index: {}]   ;;  %s3481_s9 = inlined_call_operand.vmem [shape: bf16[16,4096], index: 9, kind: input, shape index: {}]   ;;  %s3482_s10 = inlined_call_operand.vmem [shape: f32[2,8,4096], index: 10, kind: output, shape index: {}]  }
   0x1   :  { %3485 = sst [smem:[#allocation7_spill]] %s3481_s9 }
   0x2   :  { %s2921_s13 = smov 0   ;;  %s2923_s14 = smov 0  }
   0x3   :  { %s2925_s15 = smov 0   ;;  %s2927_s16 = smov 0  }
   0x4   :  { %s2929_s17 = smov 0   ;;  %s2931_s18 = smov 0  }
   0x5   :  { %s2933_s19 = smov 0  }
   0x6 LB: > { %3486 = sst [smem:[#allocation4_spill]] %s2856_s18  ;;  %s29_s20 = sadd.s32 1, %s2852_s17  ;;  %s2860_s19 = sphi %s2933_s19, %s20_s19   ;;  %s2856_s18 = sphi %s2931_s18, %s3492_s18   ;;  %s2852_s17 = sphi %s2929_s17, %s3496_s17   ;;  %s2848_s16 = sphi %s2927_s16, %s3490_s16   ;;  %s2844_s15 = sphi %s2925_s15, %s3495_s15   ;;  %s2840_s14 = sphi %s2923_s14, %s3494_s14   ;;  %s2836_s13 = sphi %s2921_s13, %s3493_s13  }
   0x7   : > { %s32_s21 = sadd.s32 1, %s2856_s18  ;;  %p30_p0 = scmp.ge.s32.totalorder %s29_s20, 4 }
   0x8   : > { %s233_s22 = sadd.s32 1, %s2840_s14  ;;  %p240_p1 = scmp.ne.s32.totalorder %s2840_s14, %s2836_s13 }
   0x9   : > { %p241_p2 = scmp.eq.s32.totalorder %s2860_s19, 0  ;;  %s3498_s20 = smov (%p30_p0, %s29_s20), 0 }
   0xa   : > { %3487 = sst [smem:[#allocation5_spill]] %s3498_s20  ;;  %s3500_s21 = smov (!%p30_p0, %s32_s21), %s2856_s18 }
   0xb   : > { %s230_s23 = ssub.s32 %s2852_s17, %s3498_s20  ;;  %p242_p3 = por %p241_p2, %p240_p1 }
   0xc   : > { %p34_p4 = scmp.ge.s32.totalorder %s3500_s21, 2  ;;  %p231_p5 = scmp.eq.s32.totalorder %s230_s23, 0 }
   0xd   : > { %p2254_p6 = scmp.ge.s32.totalorder %s2860_s19, 8 }
   0xe   : > { %s3502_s21 = smov (%p34_p4, %s3500_s21), 0 }
   0xf   : > { %3488 = sst [smem:[#allocation6_spill]] %s3502_s21  ;;  %318 = sbr.rel (%p2254_p6) target bundleno = 36 (0x24), region = 48 }
  0x10   : > { %s2970_s24 = scalar_select %p231_p5, %s2840_s14, %s233_s22  }
  0x16   : > { %329 = sbr.rel (!%p242_p3) target bundleno = 36 (0x24), region = 56  ;;  %s331_s25 = sand.u32 (%p242_p3), 1, %s2840_s14  }
  0x17   : > { %s2414_s26 = sshll.u32 (%p242_p3), %s2852_s17, 5  ;;  %s2255_s27 = sshll.u32 (%p242_p3), %s331_s25, 6 }
  0x18   : > { %s3489_s9 = sld [smem:[#allocation7_spill]] (%p242_p3)  ;;  %s333_s11 = scalar_lea.vmem (%p242_p3), [#allocation3], %s2255_s27 }
  0x1e   : > { %s336_s30 = scalar_lea.vmem %s3489_s9, %s2414_s26 }
  0x1f   : > { %v349_v0 = vld [vmem:[%s336_s30] sm:$0xff]  ;;  %v351_v1 = vld [vmem:[%s336_s30 + $0x8] sm:$0xff]  ;;  %v353_v2 = vld [vmem:[%s336_s30 + $0x10] sm:$0xff] }
  0x20   : > { %350 = vst [vmem:[%s333_s11] sm:$0xff] %v349_v0  ;;  %352 = vst [vmem:[%s333_s11 + $0x8] sm:$0xff] %v351_v1  ;;  %v355_v3 = vld [vmem:[%s336_s30 + $0x18] sm:$0xff]  ;;  %v357_v4 = vld [vmem:[%s336_s30 + $0x80] sm:$0xff] }
  0x21   : > { %354 = vst [vmem:[%s333_s11 + $0x10] sm:$0xff] %v353_v2  ;;  %v359_v5 = vld [vmem:[%s336_s30 + $0x88] sm:$0xff]  ;;  %356 = vst [vmem:[%s333_s11 + $0x18] sm:$0xff] %v355_v3  ;;  %v361_v6 = vld [vmem:[%s336_s30 + $0x90] sm:$0xff] }
  0x22   : > { %358 = vst [vmem:[%s333_s11 + $0x20] sm:$0xff] %v357_v4  ;;  %360 = vst [vmem:[%s333_s11 + $0x28] sm:$0xff] %v359_v5  ;;  %v363_v7 = vld [vmem:[%s336_s30 + $0x98] sm:$0xff] }
  0x23   : > { %362 = vst [vmem:[%s333_s11 + $0x30] sm:$0xff] %v361_v6  ;;  %364 = vst [vmem:[%s333_s11 + $0x38] sm:$0xff] %v363_v7 }
  0x24 PF: > { %p2258_p7 = scmp.ge.s32.totalorder %s2860_s19, 1  ;;  %p369_p8 = scmp.lt.s32.totalorder %s2860_s19, 9 }
  0x26   : > { %p370_p9 = pnand %p2258_p7, %p369_p8 }
  0x27   : > { %s376_s12 = sand.u32 (!%p370_p9), 1, %s2836_s13   ;;  %p422_p10 = scmp.lt.s32.totalorder (!%p370_p9), %s2848_s16, 1 }
  0x28   : > { %373 = sbr.rel (%p370_p9) target bundleno = 1299 (0x513), region = 79  ;;  %s2259_s22 = sshll.u32 (!%p370_p9), %s376_s12, 6 }
  0x29   : > { %s2261_s23 = sshll.u32 (!%p370_p9), %s2844_s15, 3  ;;  %s2994_s13 = scalar_lea.vmem (!%p370_p9), [#allocation3], %s2259_s22 }
  0x2a   : > { %p431_p11 = scmp.lt.s32.totalorder (!%p370_p9), %s2261_s23, 31  ;;  %p2264_p12 = scmp.ne.s32.totalorder (!%p370_p9), %s2844_s15, 0 }
  0x2f   : > { %s3504_s16 = smov (!%p422_p10, %s2848_s16), 1  ;;  %s3506_s23 = smov (!%p431_p11, %s2261_s23), 31 }
  0x30   : > { %s2591_s25 = smul.u32 48, %s3504_s16  ;;  %s2262_s26 = sshll.u32 %s3504_s16, 5  ;;  %v2653_v8 = vld [vmem:[%s3473_s1 + $0x40] sm:$0xff] (!%p2264_p12)   ;;  %v2657_v12 = vld [vmem:[%s3473_s1 + $0x48] sm:$0xff] (!%p2264_p12)   ;;  %v2661_v16 = vld [vmem:[%s3473_s1 + $0x50] sm:$0xff] (!%p2264_p12)   ;;  %vm2864_vm0 = vmmov (!%p2264_p12), 0  }
  0x31   : > { %s434_s27 = sadd.s32 %s2262_s26, %s3506_s23  ;;  %442 = sbr.rel (%p2264_p12) target bundleno = 1068 (0x42c), region = 87  ;;  %v2654_v9 = vld [vmem:[%s3473_s1 + $0xc0] sm:$0xff] (!%p2264_p12)   ;;  %2415 = vmatprep.subr.bf16.mxu0 (!%p2264_p12), %v2653_v8  ;;  %v2658_v13 = vld [vmem:[%s3473_s1 + $0xc8] sm:$0xff] (!%p2264_p12)   ;;  %v2662_v17 = vld [vmem:[%s3473_s1 + $0xd0] sm:$0xff] (!%p2264_p12)   ;;  %vm1922_vm1 = vcmask (!%p2264_p12), 125952  }
  0x32   : > { %s2987_s30 = scalar_lea.vmem %s3472_s0, %s2591_s25  ;;  %s2263_s11 = sshll.u32 %s434_s27, 3  ;;  %v2655_v10 = vld [vmem:[%s3473_s1] sm:$0xff] (!%p2264_p12)   ;;  %2437 = vmatprep.subr.bf16.mxu1 (!%p2264_p12), %v2654_v9  ;;  %v2659_v14 = vld [vmem:[%s3473_s1 + $0x8] sm:$0xff] (!%p2264_p12)   ;;  %v2663_v18 = vld [vmem:[%s3473_s1 + $0x10] sm:$0xff] (!%p2264_p12)  }
  0x33   : > { %s2992_s20 = scalar_lea.vmem %s3482_s10, %s2263_s11  ;;  %v2656_v11 = vld [vmem:[%s3473_s1 + $0x80] sm:$0xff] (!%p2264_p12)   ;;  %2416 = vmatpush3.bf16.msra.mxu0 (!%p2264_p12), %v2655_v10  ;;  %v2660_v15 = vld [vmem:[%s3473_s1 + $0x88] sm:$0xff] (!%p2264_p12)   ;;  %v2664_v19 = vld [vmem:[%s3473_s1 + $0x90] sm:$0xff] (!%p2264_p12)  }
  0x34   : > { %2438 = vmatpush3.bf16.msra.mxu1 (!%p2264_p12), %v2656_v11  ;;  %2417 = vmatprep.subr.bf16.mxu0 (!%p2264_p12), %v2657_v12  ;;  %v2665_v20 = vld [vmem:[%s3473_s1 + $0x58] sm:$0xff] (!%p2264_p12)   ;;  %v2669_v24 = vld [vmem:[%s3473_s1 + $0x60] sm:$0xff] (!%p2264_p12)   ;;  %v2673_v28 = vld [vmem:[%s3473_s1 + $0x68] sm:$0xff] (!%p2264_p12)  }
  0x35   : > { %2439 = vmatprep.subr.bf16.mxu1 (!%p2264_p12), %v2658_v13  ;;  %v2666_v21 = vld [vmem:[%s3473_s1 + $0xd8] sm:$0xff] (!%p2264_p12)   ;;  %v2670_v25 = vld [vmem:[%s3473_s1 + $0xe0] sm:$0xff] (!%p2264_p12)   ;;  %v2674_v29 = vld [vmem:[%s3473_s1 + $0xe8] sm:$0xff] (!%p2264_p12)  }
  0x36   : > { %v2667_v22 = vld [vmem:[%s3473_s1 + $0x18] sm:$0xff] (!%p2264_p12)   ;;  %v2671_v26 = vld [vmem:[%s3473_s1 + $0x20] sm:$0xff] (!%p2264_p12)   ;;  %v2675_v30 = vld [vmem:[%s3473_s1 + $0x28] sm:$0xff] (!%p2264_p12)  }
  0x37   : > { %2418 = vmatpush3.bf16.msra.mxu0 (!%p2264_p12), %v2659_v14  ;;  %v2668_v23 = vld [vmem:[%s3473_s1 + $0x98] sm:$0xff] (!%p2264_p12)   ;;  %v2672_v27 = vld [vmem:[%s3473_s1 + $0xa0] sm:$0xff] (!%p2264_p12)   ;;  %v2676_v31 = vld [vmem:[%s3473_s1 + $0xa8] sm:$0xff] (!%p2264_p12)  }
  0x38   : > { %2440 = vmatpush3.bf16.msra.mxu1 %v2660_v15  ;;  %2419 = vmatprep.subr.bf16.mxu0 %v2661_v16  ;;  %v2677_v32 = vld [vmem:[%s3473_s1 + $0x70] sm:$0xff]   ;;  %v2681_v36 = vld [vmem:[%s3473_s1 + $0x78] sm:$0xff]   ;;  %v2688_v42 = vld [vmem:[%s2987_s30 + $0x8] ss:$24 sps:$4 sm:$0xff]  }
  0x39   : > { %2441 = vmatprep.subr.bf16.mxu1 %v2662_v17  ;;  %v2678_v33 = vld [vmem:[%s3473_s1 + $0xf0] sm:$0xff]   ;;  %v2682_v37 = vld [vmem:[%s3473_s1 + $0xf8] sm:$0xff]   ;;  %v2690_v43 = vld [vmem:[%s2987_s30 + $0xc] ss:$24 sps:$4 sm:$0xff]  }
  0x3a   : > { %v2679_v34 = vld [vmem:[%s3473_s1 + $0x30] sm:$0xff]   ;;  %v2683_v38 = vld [vmem:[%s3473_s1 + $0x38] sm:$0xff]   ;;  %v2691_v44 = vld [vmem:[%s3473_s1 + $0x140] sm:$0xff]   ;;  %936 = vmatprep.mubr.bf16.mxu1 %v2690_v43 }
  0x3b   : > { %2420 = vmatpush3.bf16.msra.mxu0 %v2663_v18  ;;  %v2680_v35 = vld [vmem:[%s3473_s1 + $0xb0] sm:$0xff]   ;;  %v2684_v39 = vld [vmem:[%s3473_s1 + $0xb8] sm:$0xff]   ;;  %v2692_v45 = vld [vmem:[%s3473_s1 + $0x100] sm:$0xff]  }
  0x3c   : > { %2442 = vmatpush3.bf16.msra.mxu1 %v2664_v19  ;;  %2421 = vmatprep.subr.bf16.mxu0 %v2665_v20  ;;  %v2685_v40 = vld [vmem:[%s2987_s30] ss:$24 sps:$4 sm:$0xff]   ;;  %v2687_v41 = vld [vmem:[%s2987_s30 + $0x4] ss:$24 sps:$4 sm:$0xff]   ;;  %v2693_v46 = vld [vmem:[%s3473_s1 + $0x148] sm:$0xff]  }
  0x3d   : > { %2443 = vmatprep.subr.bf16.mxu1 %v2666_v21  ;;  %895 = vmatprep.mubr.bf16.mxu0 %v2687_v41  ;;  %v2694_v47 = vld [vmem:[%s3473_s1 + $0x108] sm:$0xff]   ;;  %v2695_v48 = vld [vmem:[%s3473_s1 + $0x150] sm:$0xff]   ;;  %v2697_v50 = vld [vmem:[%s3473_s1 + $0x158] sm:$0xff]  }
  0x3e   : > { %v2696_v49 = vld [vmem:[%s3473_s1 + $0x110] sm:$0xff]   ;;  %v2698_v51 = vld [vmem:[%s3473_s1 + $0x118] sm:$0xff]   ;;  %v2699_v52 = vld [vmem:[%s3473_s1 + $0x160] sm:$0xff]  }
  0x3f   : > { %2422 = vmatpush3.bf16.msra.mxu0 %v2667_v22  ;;  %v2700_v53 = vld [vmem:[%s3473_s1 + $0x120] sm:$0xff]   ;;  %v2701_v54 = vld [vmem:[%s3473_s1 + $0x168] sm:$0xff]   ;;  %v2703_v57 = vld [vmem:[%s3473_s1 + $0x170] sm:$0xff]  }
  0x40   : > { %2444 = vmatpush3.bf16.msra.mxu1 %v2668_v23  ;;  %2423 = vmatprep.subr.bf16.mxu0 %v2669_v24  ;;  %v2709_v55 = vld [vmem:[%s2987_s30 + $0x14] ss:$24 sps:$4 sm:$0xff]   ;;  %v2705_v59 = vld [vmem:[%s3473_s1 + $0x178] sm:$0xff]   ;;  %v2707_v61 = vld [vmem:[%s2987_s30 + $0x10] ss:$24 sps:$4 sm:$0xff]  }
  0x41   : > { %2445 = vmatprep.subr.bf16.mxu1 %v2670_v25  ;;  %v2702_v56 = vld [vmem:[%s3473_s1 + $0x128] sm:$0xff]   ;;  %v2704_v58 = vld [vmem:[%s3473_s1 + $0x130] sm:$0xff]   ;;  %v2706_v60 = vld [vmem:[%s3473_s1 + $0x138] sm:$0xff]  }
  0x42   : > { %v2710_v62 = vld [vmem:[%s3474_s2] ss:$16 sps:$4 sm:$0xff]   ;;  %v2712_v63 = vld [vmem:[%s3474_s2 + $0x4] ss:$16 sps:$4 sm:$0xff]   ;;  %v2713_v0 = vld [vmem:[%s3474_s2 + $0x8] ss:$16 sps:$4 sm:$0xff]  }
  0x43   : > { %2424 = vmatpush3.bf16.msra.mxu0 %v2671_v26  ;;  %v2715_v1 = vld [vmem:[%s3474_s2 + $0xc] ss:$16 sps:$4 sm:$0xff]   ;;  %v2718_v2 = vld [vmem:[%s3474_s2 + $0x24] ss:$16 sps:$4 sm:$0xff]   ;;  %v2716_v4 = vld [vmem:[%s3474_s2 + $0x20] ss:$16 sps:$4 sm:$0xff]  }
  0x44   : > { %2446 = vmatpush3.bf16.msra.mxu1 %v2672_v27  ;;  %2425 = vmatprep.subr.bf16.mxu0 %v2673_v28  ;;  %v2721_v3 = vld [vmem:[%s3474_s2 + $0x2c] ss:$16 sps:$4 sm:$0xff]   ;;  %v2719_v5 = vld [vmem:[%s3474_s2 + $0x28] ss:$16 sps:$4 sm:$0xff]   ;;  %v2724_v6 = vld [vmem:[%s3474_s2 + $0x44] ss:$16 sps:$4 sm:$0xff]  }
  0x45   : > { %2447 = vmatprep.subr.bf16.mxu1 %v2674_v29  ;;  %v2727_v7 = vld [vmem:[%s3474_s2 + $0x4c] ss:$16 sps:$4 sm:$0xff]   ;;  %v2722_v8 = vld [vmem:[%s3474_s2 + $0x40] ss:$16 sps:$4 sm:$0xff]   ;;  %v2725_v9 = vld [vmem:[%s3474_s2 + $0x48] ss:$16 sps:$4 sm:$0xff]  }
  0x46   : > { %v2730_v10 = vld [vmem:[%s3474_s2 + $0x64] ss:$16 sps:$4 sm:$0xff]   ;;  %v2733_v11 = vld [vmem:[%s3474_s2 + $0x6c] ss:$16 sps:$4 sm:$0xff]   ;;  %v2728_v12 = vld [vmem:[%s3474_s2 + $0x60] ss:$16 sps:$4 sm:$0xff]  }
  0x47   : > { %2426 = vmatpush3.bf16.msra.mxu0 %v2675_v30  ;;  %v2731_v13 = vld [vmem:[%s3474_s2 + $0x68] ss:$16 sps:$4 sm:$0xff]   ;;  %v2736_v14 = vld [vmem:[%s3474_s2 + $0x84] ss:$16 sps:$4 sm:$0xff]   ;;  %v2739_v15 = vld [vmem:[%s3474_s2 + $0x8c] ss:$16 sps:$4 sm:$0xff]  }
  0x48   : > { %2448 = vmatpush3.bf16.msra.mxu1 %v2676_v31  ;;  %2427 = vmatprep.subr.bf16.mxu0 %v2677_v32  ;;  %v2734_v16 = vld [vmem:[%s3474_s2 + $0x80] ss:$16 sps:$4 sm:$0xff]   ;;  %v2737_v17 = vld [vmem:[%s3474_s2 + $0x88] ss:$16 sps:$4 sm:$0xff]   ;;  %v2742_v18 = vld [vmem:[%s3474_s2 + $0xa4] ss:$16 sps:$4 sm:$0xff]  }
  0x49   : > { %2449 = vmatprep.subr.bf16.mxu1 %v2678_v33  ;;  %v2740_v19 = vld [vmem:[%s3474_s2 + $0xa0] ss:$16 sps:$4 sm:$0xff]   ;;  %v2745_v20 = vld [vmem:[%s3474_s2 + $0xac] ss:$16 sps:$4 sm:$0xff]   ;;  %v2743_v21 = vld [vmem:[%s3474_s2 + $0xa8] ss:$16 sps:$4 sm:$0xff]  }
  0x4a   : > { %v2748_v22 = vld [vmem:[%s3474_s2 + $0xc4] ss:$16 sps:$4 sm:$0xff]   ;;  %v2746_v23 = vld [vmem:[%s3474_s2 + $0xc0] ss:$16 sps:$4 sm:$0xff]   ;;  %v2751_v24 = vld [vmem:[%s3474_s2 + $0xcc] ss:$16 sps:$4 sm:$0xff]  }
  0x4b   : > { %2428 = vmatpush3.bf16.msra.mxu0 %v2679_v34  ;;  %v2749_v25 = vld [vmem:[%s3474_s2 + $0xc8] ss:$16 sps:$4 sm:$0xff]   ;;  %v2754_v26 = vld [vmem:[%s3474_s2 + $0xe4] ss:$16 sps:$4 sm:$0xff]   ;;  %v2752_v27 = vld [vmem:[%s3474_s2 + $0xe0] ss:$16 sps:$4 sm:$0xff]  }
  0x4c   : > { %2450 = vmatpush3.bf16.msra.mxu1 %v2680_v35  ;;  %2429 = vmatprep.subr.bf16.mxu0 %v2681_v36  ;;  %v2757_v28 = vld [vmem:[%s3474_s2 + $0xec] ss:$16 sps:$4 sm:$0xff]   ;;  %v2755_v29 = vld [vmem:[%s3474_s2 + $0xe8] ss:$16 sps:$4 sm:$0xff]   ;;  %v2862_v30 = vmov 0   ;;  %v2863_v31 = vmov 0.0  }
  0x4d   : > { %2451 = vmatprep.subr.bf16.mxu1 %v2682_v37  ;;  %2652 = vset.pattern.permute.xlu0 %v2862_v30 }
  0x4f   : > { %2430 = vmatpush3.bf16.msra.mxu0 %v2683_v38 }
  0x50   : > { %2452 = vmatpush3.bf16.msra.mxu1 %v2684_v39  ;;  %2459 = vmatprep.subr.bf16.mxu0 %v2691_v44 }
  0x51   : > { %1203 = vmatprep.subr.bf16.mxu1 %v2712_v63  ;;  %v2761_v63 = vld [vmem:[%s3475_s3 + $0x18] sm:$0xff]  }
  0x52   : > { %896 = vmatmul.mubr.bf16.vlgmr.msra.gmra.mrb[0].mxu0 %v2685_v40 }
  0x53   : > { %937 = vmatmul.mubr.bf16.vlgmr.msra.gmra.mrb[0].mxu1 %v2688_v42  ;;  %2460 = vmatpush3.bf16.msra.mxu0 %v2692_v45 }
  0x54   : > { %2461 = vmatprep.subr.bf16.mxu0 %v2693_v46  ;;  %977 = vmatprep.mubr.bf16.mxu0 %v2709_v55 }
  0x55   : > { %1204 = vmatpush1.bf16.msra.mxu1 %v2710_v62  ;;  %1235 = vmatprep.mubr.bf16.mxu1 %v2862_v30 }
  0x56   : > { %1205 = vmatprep.subr.bf16.mxu1 %v2718_v2 }
  0x57   : > { %2462 = vmatpush3.bf16.msra.mxu0 %v2694_v47 }
  0x58   : > { %2463 = vmatprep.subr.bf16.mxu0 %v2695_v48 }
  0x59   : > { %1206 = vmatpush1.bf16.msra.mxu1 %v2716_v4 }
  0x5a   : > { %1207 = vmatprep.subr.bf16.mxu1 %v2724_v6 }
  0x5b   : > { %2464 = vmatpush3.bf16.msra.mxu0 %v2696_v49 }
  0x5c   : > { %2465 = vmatprep.subr.bf16.mxu0 %v2697_v50 }
  0x5d   : > { %1208 = vmatpush1.bf16.msra.mxu1 %v2722_v8 }
  0x5e   : > { %1209 = vmatprep.subr.bf16.mxu1 %v2730_v10  ;;  %v2767_v10 = vld [vmem:[%s3476_s4] sm:$0xff]  }
  0x5f   : > { %2466 = vmatpush3.bf16.msra.mxu0 %v2698_v51 }
  0x60   : > { %2467 = vmatprep.subr.bf16.mxu0 %v2699_v52 }
  0x61   : > { %1210 = vmatpush1.bf16.msra.mxu1 %v2728_v12  ;;  %v2768_v12 = vld [vmem:[%s3476_s4 + $0x48] sm:$0xff]  }
  0x62   : > { %1211 = vmatprep.subr.bf16.mxu1 %v2736_v14  ;;  %v2770_v14 = vld [vmem:[%s3476_s4 + $0x50] sm:$0xff]  }
  0x63   : > { %2468 = vmatpush3.bf16.msra.mxu0 %v2700_v53 }
  0x64   : > { %2469 = vmatprep.subr.bf16.mxu0 %v2701_v54 }
  0x65   : > { %1212 = vmatpush1.bf16.msra.mxu1 %v2734_v16  ;;  %v2772_v16 = vld [vmem:[%s3476_s4 + $0x58] sm:$0xff]  }
  0x66   : > { %1213 = vmatprep.subr.bf16.mxu1 %v2742_v18  ;;  %v2774_v18 = vld [vmem:[%s3476_s4 + $0x60] sm:$0xff]  }
  0x67   : > { %2470 = vmatpush3.bf16.msra.mxu0 %v2702_v56  ;;  %v2758_v56 = vld [vmem:[%s3475_s3] sm:$0xff]  }
  0x68   : > { %2471 = vmatprep.subr.bf16.mxu0 %v2703_v57 }
  0x69   : > { %1214 = vmatpush1.bf16.msra.mxu1 %v2740_v19  ;;  %v2775_v19 = vld [vmem:[%s3476_s4 + $0x20] sm:$0xff]  }
  0x6a   : > { %1215 = vmatprep.subr.bf16.mxu1 %v2748_v22  ;;  %v2778_v22 = vld [vmem:[%s3476_s4 + $0x70] sm:$0xff]  }
  0x6b   : > { %2472 = vmatpush3.bf16.msra.mxu0 %v2704_v58 }
  0x6c   : > { %2473 = vmatprep.subr.bf16.mxu0 %v2705_v59  ;;  %v2759_v59 = vld [vmem:[%s3475_s3 + $0x8] sm:$0xff]  }
  0x6d   : > { %1216 = vmatpush1.bf16.msra.mxu1 %v2746_v23  ;;  %v2779_v23 = vld [vmem:[%s3476_s4 + $0x30] sm:$0xff]  }
  0x6e   : > { %1217 = vmatprep.subr.bf16.mxu1 %v2754_v26  ;;  %v2782_v26 = vld [vmem:[%s3476_s4 + $0x38] sm:$0xff]  }
  0x6f   : > { %2474 = vmatpush3.bf16.msra.mxu0 %v2706_v60 }
  0x70   : > { %1246 = vmatprep.subr.bf16.mxu0 %v2715_v1  ;;  %v2762_v1 = vld [vmem:[%s3475_s3 + $0x20] sm:$0xff]  }
  0x71   : > { %1218 = vmatpush1.bf16.msra.mxu1 %v2752_v27  ;;  %v2783_v27 = vld [vmem:[%s3476_s4 + $0x108] sm:$0xff]  }
  0x72   : > { %978 = vmatmul.mubr.bf16.vlgmr.msra.gmra.mrb[4].mxu0 %v2707_v61  ;;  %2545 = vmatprep.subr.bf16.mxu1 %v2863_v31  ;;  %v2760_v61 = vld [vmem:[%s3475_s3 + $0x10] sm:$0xff]  }
  0x73   : > { %1247 = vmatpush1.bf16.msra.mxu0 %v2713_v0  ;;  %1278 = vmatprep.mubr.bf16.mxu0 %v2862_v30  ;;  %v2786_v30 = vld [vmem:[%s3476_s4 + $0x120] sm:$0xff]  }
  0x74   : > { %1248 = vmatprep.subr.bf16.mxu0 %v2721_v3  ;;  %v2763_v3 = vld [vmem:[%s3475_s3 + $0x28] sm:$0xff]  }
  0x77   : > { %1249 = vmatpush1.bf16.msra.mxu0 %v2719_v5  ;;  %v2764_v5 = vld [vmem:[%s3475_s3 + $0x30] sm:$0xff]  }
  0x78   : > { %1250 = vmatprep.subr.bf16.mxu0 %v2727_v7  ;;  %v2765_v7 = vld [vmem:[%s3475_s3 + $0x38] sm:$0xff]  }
  0x7b   : > { %1251 = vmatpush1.bf16.msra.mxu0 %v2725_v9  ;;  %v2766_v9 = vld [vmem:[%s3476_s4 + $0x40] sm:$0xff]  }
  0x7c   : > { %1252 = vmatprep.subr.bf16.mxu0 %v2733_v11 }
  0x7f   : > { %1253 = vmatpush1.bf16.msra.mxu0 %v2731_v13  ;;  %v2769_v13 = vld [vmem:[%s3476_s4 + $0x8] sm:$0xff]  }
  0x80   : > { %1254 = vmatprep.subr.bf16.mxu0 %v2739_v15  ;;  %v2771_v15 = vld [vmem:[%s3476_s4 + $0x10] sm:$0xff]  }
  0x83   : > { %1255 = vmatpush1.bf16.msra.mxu0 %v2737_v17  ;;  %v2773_v17 = vld [vmem:[%s3476_s4 + $0x18] sm:$0xff]  }
  0x84   : > { %1256 = vmatprep.subr.bf16.mxu0 %v2745_v20  ;;  %v2776_v20 = vld [vmem:[%s3476_s4 + $0x68] sm:$0xff]  }
  0x87   : > { %1257 = vmatpush1.bf16.msra.mxu0 %v2743_v21  ;;  %v2777_v21 = vld [vmem:[%s3476_s4 + $0x28] sm:$0xff]  }
  0x88   : > { %1258 = vmatprep.subr.bf16.mxu0 %v2751_v24  ;;  %v2780_v24 = vld [vmem:[%s3476_s4 + $0x100] sm:$0xff]  }
  0x8b   : > { %1259 = vmatpush1.bf16.msra.mxu0 %v2749_v25  ;;  %v2781_v25 = vld [vmem:[%s3476_s4 + $0x78] sm:$0xff]  }
  0x8c   : > { %1260 = vmatprep.subr.bf16.mxu0 %v2757_v28  ;;  %v2784_v28 = vld [vmem:[%s3476_s4 + $0x110] sm:$0xff]  }
  0x8f   : > { %1261 = vmatpush1.bf16.msra.mxu0 %v2755_v29  ;;  %v2785_v29 = vld [vmem:[%s3476_s4 + $0x118] sm:$0xff]  }
  0x90   : > { %2565 = vmatprep.subr.bf16.mxu0 %v2863_v31 }
 0x125   : > { %v2431_v32 = vpop.f32.mrb[0].mxu0 }
 0x126   : > { %v2453_v33 = vpop.f32.mrb[0].mxu1  ;;  %v2432_v34 = vpop.f32.mrb[1].mxu0 }
 0x127   : > { %v2433_v35 = vadd.f32 %v2432_v34, %v2431_v32  ;;  %v2454_v36 = vpop.f32.mrb[1].mxu1  ;;  %v2434_v37 = vpop.f32.mrb[2].mxu0  ;;  %v2787_v32 = vld [vmem:[%s3476_s4 + $0x128] sm:$0xff]   ;;  %v2789_v34 = vld [vmem:[%s3476_s4 + $0x138] sm:$0xff]  }
 0x128   : > { %v2455_v38 = vadd.f32 %v2454_v36, %v2453_v33  ;;  %v2456_v39 = vpop.f32.mrb[2].mxu1  ;;  %v2435_v40 = vpop.f32.mrb[3].mxu0  ;;  %v2788_v33 = vld [vmem:[%s3476_s4 + $0x130] sm:$0xff]   ;;  %v1023_v36 = vlaneseq }
 0x129   : > { %v2436_v41 = vadd.f32 %v2435_v40, %v2434_v37  ;;  %v2457_v42 = vpop.f32.mrb[3].mxu1  ;;  %v1021_v40 = vld [vmem:[%s3478_s6] sm:$0xf] }
 0x12a   : > { %v939_v43 = vadd.f32 %v2455_v38, %v2433_v35  ;;  %v2458_v44 = vadd.f32 %v2457_v42, %v2456_v39  ;;  %v2790_v35 = vld [vmem:[%s3476_s4 + $0xc0] sm:$0xff]   ;;  %v3363_v37 = vshrl.u32 %v1023_v36, 7 }
 0x12c   : > { %v942_v45 = vadd.f32 %v2458_v44, %v2436_v41  ;;  %v1025_v38 = vsub.s32 0, %v3363_v37  ;;  %v1033_v39 = vsub.s32 2, %v3363_v37  ;;  %v1029_v41 = vsub.s32 1, %v3363_v37 }
 0x12d   : > { %v1037_v42 = vsub.s32 3, %v3363_v37 }
 0x12e   : > { %v1034_v44 = vrot.slane %v1021_v40, %v1033_v39 }
 0x145   : > { %v2475_v46 = vpop.f32.mrb[4].mxu0 }
 0x146   : > { %v2476_v47 = vpop.f32.mrb[5].mxu0 }
 0x147   : > { %v2477_v48 = vadd.f32 %v2476_v47, %v2475_v46  ;;  %v2478_v49 = vpop.f32.mrb[6].mxu0  ;;  %v1038_v46 = vrot.slane %v1021_v40, %v1037_v42 }
 0x148   : > { %v2479_v50 = vpop.f32.mrb[7].mxu0 }
 0x149   : > { %v980_v51 = vadd.f32 %v2477_v48, %v939_v43  ;;  %v2480_v52 = vadd.f32 %v2479_v50, %v2478_v49  ;;  %v1026_v43 = vrot.slane %v1021_v40, %v1025_v38 }
 0x14b   : > { %v983_v53 = vadd.f32 %v2480_v52, %v942_v45  ;;  %v986_v54 = vmax.f32 %v980_v51, 0.0  ;;  %v1030_v45 = vrot.slane %v1021_v40, %v1029_v41 }
 0x14d   : > { %v987_v55 = vmax.f32 %v983_v53, 0.0 }
 0x14f   : > { %v988_v57 = vpack.c.bf16 %v987_v55, %v986_v54  ;;  %v1297_v58 = vadd.f32 %v987_v55, %v986_v54 }
 0x151   : > { %1236 = vmatmul.mubr.bf16.vlgmr.msra.gmra.mrb[4].mxu1 %v988_v57  ;;  %1279 = vmatmul.mubr.bf16.vlgmr.msra.gmra.mrb[8].mxu0 %v988_v57  ;;  %v1298_v60 = vrot.slane %v1297_v58, 4 }
 0x152   : > { %2546 = vmatpush3.bf16.msra.mxu1 %v2758_v56  ;;  %2561 = vmatprep.mubr.msk.bf16.mxu1 %vm2864_vm0, %v2863_v31 }
 0x153   : > { %2547 = vmatprep.subr.bf16.mxu1 %v2863_v31  ;;  %2581 = vmatprep.mubr.msk.bf16.mxu0 %vm2864_vm0, %v2863_v31  ;;  %v1299_v62 = vadd.f32 %v1298_v60, %v1297_v58 }
 0x154   : > { %2566 = vmatpush3.bf16.msra.mxu0 %v2780_v24  ;;  %v2797_v24 = vld [vmem:[%s3476_s4 + $0x98] sm:$0xff]  }
 0x155   : > { %v1300_v0 = vrot.slane %v1299_v62, 2  ;;  %2567 = vmatprep.subr.bf16.mxu0 %v2863_v31 }
 0x156   : > { %2548 = vmatpush3.bf16.msra.mxu1 %v2759_v59 }
 0x157   : > { %2549 = vmatprep.subr.bf16.mxu1 %v2863_v31  ;;  %v1301_v2 = vadd.f32 %v1300_v0, %v1299_v62 }
 0x158   : > { %2568 = vmatpush3.bf16.msra.mxu0 %v2783_v27  ;;  %v2800_v27 = vld [vmem:[%s3476_s4 + $0xe8] sm:$0xff]  }
 0x159   : > { %v1302_v4 = vrot.slane %v1301_v2, 1  ;;  %2569 = vmatprep.subr.bf16.mxu0 %v2863_v31 }
 0x15a   : > { %2550 = vmatpush3.bf16.msra.mxu1 %v2760_v61 }
 0x15b   : > { %2551 = vmatprep.subr.bf16.mxu1 %v2863_v31  ;;  %v1303_v6 = vadd.f32 %v1302_v4, %v1301_v2 }
 0x15c   : > { %2570 = vmatpush3.bf16.msra.mxu0 %v2784_v28  ;;  %v2801_v28 = vld [vmem:[%s3476_s4 + $0xa8] sm:$0xff]  }
 0x15d   : > { %v1305_v8 = vmul.f32 0.0625, %v1303_v6  ;;  %2571 = vmatprep.subr.bf16.mxu0 %v2863_v31 }
 0x15e   : > { %2552 = vmatpush3.bf16.msra.mxu1 %v2761_v63 }
 0x15f   : > { %2553 = vmatprep.subr.bf16.mxu1 %v2863_v31  ;;  %v1306_v11 = vpack.c.bf16 %v1305_v8, %v1305_v8 }
 0x160   : > { %2572 = vmatpush3.bf16.msra.mxu0 %v2785_v29  ;;  %v2802_v29 = vld [vmem:[%s3476_s4 + $0xf0] sm:$0xff]  }
 0x161   : > { %2573 = vmatprep.subr.bf16.mxu0 %v2863_v31 }
 0x162   : > { %2554 = vmatpush3.bf16.msra.mxu1 %v2762_v1 }
 0x163   : > { %2555 = vmatprep.subr.bf16.mxu1 %v2863_v31 }
 0x164   : > { %2574 = vmatpush3.bf16.msra.mxu0 %v2786_v30  ;;  %v2803_v30 = vld [vmem:[%s3476_s4 + $0xb0] sm:$0xff]  }
 0x165   : > { %2575 = vmatprep.subr.bf16.mxu0 %v2863_v31 }
 0x166   : > { %2556 = vmatpush3.bf16.msra.mxu1 %v2763_v3 }
 0x167   : > { %2557 = vmatprep.subr.bf16.mxu1 %v2863_v31 }
 0x168   : > { %2576 = vmatpush3.bf16.msra.mxu0 %v2787_v32  ;;  %v2804_v32 = vld [vmem:[%s3476_s4 + $0xf8] sm:$0xff]  }
 0x169   : > { %2577 = vmatprep.subr.bf16.mxu0 %v2863_v31 }
 0x16a   : > { %2558 = vmatpush3.bf16.msra.mxu1 %v2764_v5 }
 0x16b   : > { %2559 = vmatprep.subr.bf16.mxu1 %v2863_v31 }
 0x16c   : > { %2578 = vmatpush3.bf16.msra.mxu0 %v2788_v33  ;;  %v2805_v33 = vld [vmem:[%s3476_s4 + $0xb8] sm:$0xff]  }
 0x16d   : > { %2579 = vmatprep.subr.bf16.mxu0 %v2863_v31 }
 0x16e   : > { %2560 = vmatpush3.bf16.msra.mxu1 %v2765_v7 }
 0x16f   : > { %2499 = vmatprep.subr.bf16.mxu1 %v2766_v9 }
 0x170   : > { %2580 = vmatpush3.bf16.msra.mxu0 %v2789_v34  ;;  %v1875_v34 = vld [vmem:[%s3480_s8] sm:$0xff] }
 0x171   : > { %2562 = vmatmul.mubr.bf16.vlgmr.msra.gmra.mrb[8].mxu1 %v1306_v11  ;;  %2521 = vmatprep.subr.bf16.mxu0 %v2790_v35  ;;  %v1323_v11 = vld [vmem:[%s3479_s7] sm:$0x1] }
 0x172   : > { %2500 = vmatpush3.bf16.msra.mxu1 %v2767_v10  ;;  %1878 = vperm.xlu0 %2652, %v1875_v34  }
 0x173   : > { %2501 = vmatprep.subr.bf16.mxu1 %v2768_v12 }
 0x176   : > { %2502 = vmatpush3.bf16.msra.mxu1 %v2769_v13 }
 0x177   : > { %2503 = vmatprep.subr.bf16.mxu1 %v2770_v14 }
 0x17a   : > { %2504 = vmatpush3.bf16.msra.mxu1 %v2771_v15 }
 0x17b   : > { %2505 = vmatprep.subr.bf16.mxu1 %v2772_v16 }
 0x17e   : > { %2506 = vmatpush3.bf16.msra.mxu1 %v2773_v17 }
 0x17f   : > { %2507 = vmatprep.subr.bf16.mxu1 %v2774_v18  ;;  %v2791_v18 = vld [vmem:[%s3476_s4 + $0x80] sm:$0xff]  }
 0x182   : > { %2508 = vmatpush3.bf16.msra.mxu1 %v2775_v19 }
 0x183   : > { %2509 = vmatprep.subr.bf16.mxu1 %v2776_v20  ;;  %v2792_v20 = vld [vmem:[%s3476_s4 + $0xc8] sm:$0xff]  }
 0x186   : > { %2510 = vmatpush3.bf16.msra.mxu1 %v2777_v21  ;;  %v2794_v21 = vld [vmem:[%s3476_s4 + $0xd0] sm:$0xff]  }
 0x187   : > { %2511 = vmatprep.subr.bf16.mxu1 %v2778_v22  ;;  %v2795_v22 = vld [vmem:[%s3476_s4 + $0x90] sm:$0xff]  }
 0x18a   : > { %2512 = vmatpush3.bf16.msra.mxu1 %v2779_v23  ;;  %v2796_v23 = vld [vmem:[%s3476_s4 + $0xd8] sm:$0xff]  }
 0x18b   : > { %2513 = vmatprep.subr.bf16.mxu1 %v2781_v25  ;;  %v2798_v25 = vld [vmem:[%s3476_s4 + $0xe0] sm:$0xff]  }
 0x18e   : > { %2514 = vmatpush3.bf16.msra.mxu1 %v2782_v26  ;;  %v2799_v26 = vld [vmem:[%s3476_s4 + $0xa0] sm:$0xff]  }
 0x18f   : > { %2585 = vmatprep.subr.bf16.mxu1 %v2863_v31 }
 0x224   : > { %v1237_v47 = vpop.f32.mrb[4].mxu1  ;;  %v1280_v48 = vpop.f32.mrb[8].mxu0 }
 0x225   : > { %v1238_v49 = vadd.f32 %v1237_v47, %v1026_v43  ;;  %v1281_v50 = vadd.f32 %v1280_v48, %v1034_v44  ;;  %v1239_v51 = vpop.f32.mrb[5].mxu1  ;;  %v1282_v52 = vpop.f32.mrb[9].mxu0 }
 0x226   : > { %v1240_v53 = vadd.f32 %v1239_v51, %v1030_v45  ;;  %v1283_v54 = vadd.f32 %v1282_v52, %v1038_v46  ;;  %v1241_v55 = vpop.f32.mrb[6].mxu1  ;;  %v1284_v56 = vpop.f32.mrb[10].mxu0 }
 0x227   : > { %v1242_v57 = vadd.f32 %v1241_v55, %v1026_v43  ;;  %v1285_v58 = vadd.f32 %v1284_v56, %v1034_v44  ;;  %v1243_v59 = vpop.f32.mrb[7].mxu1  ;;  %v1286_v60 = vpop.f32.mrb[11].mxu0  ;;  %v1289_v63 = vmax.f32 %v1238_v49, 0.0  ;;  %v1291_v0 = vmax.f32 %v1281_v50, 0.0 }
 0x228   : > { %v1244_v61 = vadd.f32 %v1243_v59, %v1030_v45  ;;  %v1287_v62 = vadd.f32 %v1286_v60, %v1038_v46  ;;  %v1290_v3 = vmax.f32 %v1240_v53, 0.0  ;;  %v1292_v4 = vmax.f32 %v1283_v54, 0.0  ;;  %v2399_v54 = vld [vmem:[%s3479_s7 + $0x1] ss:$0 sm:$0xff] }
 0x229   : > { %v1293_v1 = vmax.f32 %v1242_v57, 0.0  ;;  %v1295_v2 = vmax.f32 %v1285_v58, 0.0 }
 0x22a   : > { %v1294_v5 = vmax.f32 %v1244_v61, 0.0  ;;  %v1296_v6 = vmax.f32 %v1287_v62, 0.0  ;;  %v1873_v62 = vld [vmem:[%s3477_s5] sm:$0xf] }
 0x22b   : > { %v1413_v7 = vpack.c.bf16 %v1293_v1, %v1289_v63  ;;  %v1415_v8 = vpack.c.bf16 %v1295_v2, %v1291_v0  ;;  %v1879_v63 = vpop.permute.xlu0 %1878 }
 0x22c   : > { %v1414_v9 = vpack.c.bf16 %v1294_v5, %v1290_v3  ;;  %v1416_v10 = vpack.c.bf16 %v1296_v6, %v1292_v4 }
 0x22e   : > { %1814 = vmatprep.mubr.bf16.mxu1 %v1414_v9 }
 0x22f   : > { %1815 = vmatmul.mubr.bf16.vlgmr.msra.gmra.mrb[12].mxu1 %v1413_v7 }
 0x230   : > { %2587 = vmatprep.mubr.msk.bf16.mxu1 %vm2864_vm0, %v2863_v31  ;;  %v2793_v31 = vld [vmem:[%s3476_s4 + $0x88] sm:$0xff]  }
 0x244   : > { %v1406_v12 = vpop.f32.mrb[8].mxu1 }
 0x245   : > { %v1407_v13 = vadd.f32 %v1406_v12, %v1323_v11  ;;  %v2563_v14 = vpop.f32.mrb[9].mxu1 }
 0x246   : > { %v1409_v15 = vpop.f32.mrb[10].mxu1 }
 0x247   : > { %v1412_v16 = vmax.f32 %v1407_v13, 0.0  ;;  %v2564_v17 = vpop.f32.mrb[11].mxu1 }
 0x249   : > { %v1481_v19 = vpack.c.bf16 %v1412_v16, %v1412_v16 }
 0x24b   : > { %2582 = vmatmul.mubr.bf16.vlgmr.msra.gmra.mrb[12].mxu0 %v1481_v19 }
 0x24c   : > { %2522 = vmatpush3.bf16.msra.mxu0 %v2791_v18  ;;  %1855 = vmatprep.mubr.bf16.mxu0 %v1416_v10 }
 0x24d   : > { %2523 = vmatprep.subr.bf16.mxu0 %v2792_v20 }
 0x250   : > { %2524 = vmatpush3.bf16.msra.mxu0 %v2793_v31 }
 0x251   : > { %2525 = vmatprep.subr.bf16.mxu0 %v2794_v21 }
 0x254   : > { %2526 = vmatpush3.bf16.msra.mxu0 %v2795_v22 }
 0x255   : > { %2527 = vmatprep.subr.bf16.mxu0 %v2796_v23 }
 0x258   : > { %2528 = vmatpush3.bf16.msra.mxu0 %v2797_v24 }
 0x259   : > { %2529 = vmatprep.subr.bf16.mxu0 %v2798_v25 }
 0x25c   : > { %2530 = vmatpush3.bf16.msra.mxu0 %v2799_v26 }
 0x25d   : > { %2531 = vmatprep.subr.bf16.mxu0 %v2800_v27 }
 0x260   : > { %2532 = vmatpush3.bf16.msra.mxu0 %v2801_v28 }
 0x261   : > { %2533 = vmatprep.subr.bf16.mxu0 %v2802_v29 }
 0x264   : > { %2534 = vmatpush3.bf16.msra.mxu0 %v2803_v30 }
 0x265   : > { %2535 = vmatprep.subr.bf16.mxu0 %v2804_v32 }
 0x268   : > { %2536 = vmatpush3.bf16.msra.mxu0 %v2805_v33 }
 0x26b   : > { %1856 = vmatmul.mubr.bf16.vlgmr.msra.gmra.mrb[16].mxu0 %v1415_v8 }
 0x302   : > { %v2515_v35 = vpop.f32.mrb[12].mxu1 }
 0x303   : > { %v2516_v36 = vpop.f32.mrb[13].mxu1 }
 0x304   : > { %v2517_v39 = vadd.f32 %v2516_v36, %v2515_v35  ;;  %v2518_v40 = vpop.f32.mrb[14].mxu1 }
 0x305   : > { %v2519_v41 = vpop.f32.mrb[15].mxu1 }
 0x306   : > { %v2520_v42 = vadd.f32 %v2519_v41, %v2518_v40 }
 0x31e   : > { %v1580_v43 = vpop.f32.mrb[12].mxu0 }
 0x31f   : > { %v1589_v44 = vrot.slane %v1580_v43, %v1025_v38  ;;  %v2583_v45 = vpop.f32.mrb[13].mxu0 }
 0x320   : > { %v1583_v46 = vpop.f32.mrb[14].mxu0 }
 0x321   : > { %v1817_v47 = vadd.f32 %v2517_v39, %v1589_v44  ;;  %v1820_v48 = vadd.f32 %v2520_v42, %v1589_v44  ;;  %v2584_v49 = vpop.f32.mrb[15].mxu0 }
 0x33e   : > { %v2537_v50 = vpop.f32.mrb[16].mxu0 }
 0x33f   : > { %v2538_v51 = vpop.f32.mrb[17].mxu0 }
 0x340   : > { %v2539_v52 = vadd.f32 %v2538_v51, %v2537_v50  ;;  %v2540_v53 = vpop.f32.mrb[18].mxu0 }
 0x341   : > { %v2541_v55 = vpop.f32.mrb[19].mxu0 }
 0x342   : > { %v1858_v56 = vadd.f32 %v2539_v52, %v1817_v47  ;;  %v2542_v57 = vadd.f32 %v2541_v55, %v2540_v53 }
 0x344   : > { %v1869_v58 = vadd.f32 %v2399_v54, %v1858_v56  ;;  %v1861_v59 = vadd.f32 %v2542_v57, %v1820_v48 }
 0x346   : > { %v1870_v37 = vadd.f32 %v2399_v54, %v1861_v59  ;;  %v1871_v38 = vmax.f32 %v1869_v58, 0.0 }
 0x348   : > { %v1872_v60 = vmax.f32 %v1870_v37, 0.0 }
 0x34a   : > { %v1874_v61 = vpack.c.bf16 %v1872_v60, %v1871_v38 }
 0x34c   : > { %2586 = vmatpush3.bf16.xpose.msra.mxu1 %v1874_v61 }
 0x353   : > { %2588 = vmatmul.mubr.bf16.vlgmr.msra.gmra.mrb[16].mxu1 %v1873_v62 }
 0x426   : > { %v1915_v0 = vpop.f32.mrb[16].mxu1 }
 0x427   : > { %v1916_v1 = vadd.f32 %v1915_v0, %v1879_v63  ;;  %v2589_v2 = vpop.f32.mrb[17].mxu1 }
 0x428   : > { %v1918_v3 = vpop.f32.mrb[18].mxu1 }
 0x429   : > { %v1921_v4 = vpack.c.bf16 %v1916_v1, %v1916_v1  ;;  %v2590_v5 = vpop.f32.mrb[19].mxu1 }
 0x42b   : > { %1923 = vst.msk [vmem:[#allocation2] sm:$0xf] %vm1922_vm1, %v1921_v4 }
 0x42c PF: > { %v1925_v6 = vld [vmem:[%s2994_s13] sm:$0xff]  ;;  %v1926_v8 = vld [vmem:[%s2994_s13 + $0x8] sm:$0xff]  ;;  %v2865_v12 = vmov 0   ;;  %v1927_v13 = vld [vmem:[%s2994_s13 + $0x10] sm:$0xff]  ;;  %vm1973_vm2 = vcmask 130048  }
 0x42d   : > { %v1929_v7 = vld [vmem:[%s2994_s13 + $0x20] sm:$0xff]  ;;  %v1930_v10 = vld [vmem:[%s2994_s13 + $0x28] sm:$0xff]  ;;  %2009 = vmatprep.mubr.bf16.mxu0 %v2865_v12  ;;  %2050 = vmatprep.mubr.bf16.mxu1 %v2865_v12  ;;  %v1931_v16 = vld [vmem:[%s2994_s13 + $0x30] sm:$0xff] }
 0x42e   : > { %v2401_v9 = vcombine.high %v1925_v6, %v1929_v7  ;;  %v2400_v11 = vcombine.low %v1925_v6, %v1929_v7  ;;  %v2403_v14 = vcombine.high %v1926_v8, %v1930_v10  ;;  %v2402_v15 = vcombine.low %v1926_v8, %v1930_v10  ;;  %v1928_v17 = vld [vmem:[%s2994_s13 + $0x18] sm:$0xff] }
 0x42f   : > { %v1932_v18 = vld [vmem:[%s2994_s13 + $0x38] sm:$0xff]  ;;  %v2405_v19 = vcombine.high %v1927_v13, %v1931_v16  ;;  %v2404_v21 = vcombine.low %v1927_v13, %v1931_v16 }
 0x430   : > { %1977 = vmatprep.subr.bf16.mxu0 %v2401_v9  ;;  %v2407_v20 = vcombine.high %v1928_v17, %v1932_v18  ;;  %2018 = vmatprep.subr.bf16.mxu1 %v2403_v14  ;;  %v2406_v22 = vcombine.low %v1928_v17, %v1932_v18 }
 0x431   : > { %1978 = vmatpush1.bf16.msra.mxu0 %v2400_v11  ;;  %2019 = vmatpush1.bf16.msra.mxu1 %v2402_v15 }
 0x432   : > { %v1924_v31 = vld [vmem:[#allocation2] sm:$0xf]  ;;  %2059 = vmatprep.subr.bf16.mxu0 %v2405_v19  ;;  %2100 = vmatprep.subr.bf16.mxu1 %v2407_v20 }
 0x434   : > { %2408 = vmatmul.mubr.msk.bf16.vlgmr.msra.gmra.mrb[0].mxu0 %vm1973_vm2, %v1924_v31  ;;  %2409 = vmatmul.mubr.msk.bf16.vlgmr.msra.gmra.mrb[0].mxu1 %vm1973_vm2, %v1924_v31 }
 0x435   : > { %2060 = vmatpush1.bf16.msra.mxu0 %v2404_v21  ;;  %2101 = vmatpush1.bf16.msra.mxu1 %v2406_v22 }
 0x436   : > { %2091 = vmatprep.mubr.bf16.mxu0 %v2865_v12  ;;  %2132 = vmatprep.mubr.bf16.mxu1 %v2865_v12 }
 0x43c   : > { %2410 = vmatmul.mubr.msk.bf16.vlgmr.msra.gmra.mrb[4].mxu0 %vm1973_vm2, %v1924_v31  ;;  %2411 = vmatmul.mubr.msk.bf16.vlgmr.msra.gmra.mrb[4].mxu1 %vm1973_vm2, %v1924_v31 }
 0x507   : > { %v2011_v23 = vpop.f32.mrb[0].mxu0  ;;  %v2052_v24 = vpop.f32.mrb[0].mxu1 }
 0x508   : > { %2141 = vst [vmem:[%s2992_s20] sm:$0xff] %v2011_v23  ;;  %v2013_v25 = vpop.f32.mrb[1].mxu0  ;;  %2143 = vst [vmem:[%s2992_s20 + $0x10] sm:$0xff] %v2052_v24  ;;  %v2054_v26 = vpop.f32.mrb[1].mxu1 }
 0x509   : > { %2142 = vst [vmem:[%s2992_s20 + $0x8] sm:$0xff] %v2013_v25  ;;  %v2015_v27 = vpop.f32.mrb[2].mxu0  ;;  %2144 = vst [vmem:[%s2992_s20 + $0x18] sm:$0xff] %v2054_v26  ;;  %v2056_v28 = vpop.f32.mrb[2].mxu1 }
 0x50a   : > { %v2016_v29 = vpop.f32.mrb[3].mxu0  ;;  %v2057_v30 = vpop.f32.mrb[3].mxu1 }
 0x50f   : > { %v2093_v32 = vpop.f32.mrb[4].mxu0  ;;  %v2134_v33 = vpop.f32.mrb[4].mxu1 }
 0x510   : > { %2145 = vst [vmem:[%s2992_s20 + $0x20] sm:$0xff] %v2093_v32  ;;  %v2095_v34 = vpop.f32.mrb[5].mxu0  ;;  %2147 = vst [vmem:[%s2992_s20 + $0x30] sm:$0xff] %v2134_v33  ;;  %v2136_v35 = vpop.f32.mrb[5].mxu1 }
 0x511   : > { %2146 = vst [vmem:[%s2992_s20 + $0x28] sm:$0xff] %v2095_v34  ;;  %v2097_v36 = vpop.f32.mrb[6].mxu0  ;;  %2148 = vst [vmem:[%s2992_s20 + $0x38] sm:$0xff] %v2136_v35  ;;  %v2138_v39 = vpop.f32.mrb[6].mxu1 }
 0x512   : > { %v2098_v40 = vpop.f32.mrb[7].mxu0  ;;  %v2139_v41 = vpop.f32.mrb[7].mxu1 }
 0x513 PF: > { %s20_s19 = sadd.s32 1, %s2860_s19   ;;  %s3490_s16 = sld [smem:[#allocation4_spill]] }
 0x514   : > { %p17_p13 = scmp.ge.s32.totalorder %s20_s19, 10   ;;  %s3491_s23 = sld [smem:[#allocation5_spill]] }
 0x515   : > { %s3492_s18 = sld [smem:[#allocation6_spill]]  ;;  %s3493_s13 = smov %s2840_s14 }
 0x516   : > { %s3494_s14 = smov %s2970_s24  ;;  %s3495_s15 = smov %s2852_s17 }
 0x517   :  { %19 = sbr.rel (!%p17_p13) target bundleno = 6 (0x6), region = 125 }
 0x51a   : > { %s3496_s17 = smov %s3491_s23 }

</bundles_post_ra>
